<compile_context>
chip_gen: v7x
topology: tpu7x:2x2x1
jax: 0.10.0
libtpu: 0.0.40
codegen_flags: <defaults>
</compile_context>

<pallas_src>
import functools

import numpy as np

import jax
import jax.numpy as jnp
from jax.experimental import pallas as pl
from jax.experimental.pallas import tpu as pltpu


def _preemphasis_kernel(x_ref, seam_ref, o_ref, *, coef):
    # x_ref / o_ref: VMEM (tb, tT) f32 tile of the input / output.
    # seam_ref:      VMEM (1, tb, 1) f32 = prev value for this tile's local column 0.
    x = x_ref[...]                                  # (tb, tT)
    prev = pltpu.roll(x, shift=1, axis=1)           # prev[:, t] = x[:, t-1] for t >= 1
    o_ref[...] = x - coef * prev                    # lane-dense main store

    # Narrow fix-up of column 0 only (read slices straight from the refs so no
    # large value has to stay live across the patch).
    o_ref[:, :1] = x_ref[:, :1] - coef * seam_ref[0]


def _round_up(n: int, m: int) -> int:
    return ((n + m - 1) // m) * m


def _vmem_capacity_bytes() -> int:
    """Physical VMEM of the current TPU generation (conservative fallback)."""
    try:
        info = pltpu.get_tpu_info()
        cap = getattr(info, "vmem_capacity_bytes", None)
        if cap:
            return int(cap)
    except Exception:
        pass
    return 64 << 20  # assume v7x-sized VMEM if the query is unavailable


def _choose_tb(B: int, max_tb: int = 256) -> int:
    """Batch tile: full B, or a multiple-of-8 divisor of B (layout-legal)."""
    if B <= max_tb:
        return B
    d = max_tb - (max_tb % 8)
    while d >= 8:
        if B % d == 0:
            return d
        d -= 8
    # TODO(synk): pad B to a multiple of 8 instead of taking the whole batch.
    return B


def _choose_tT(T: int, tb: int, nb: int, max_block_bytes: int, min_tiles: int = 4) -> int:
    """Time tile: multiple of 128, within the block budget, >= min_tiles grid steps."""
    budget = max(128, ((max_block_bytes // (tb * 4)) // 128) * 128)
    full = _round_up(T, 128)
    want_nt = max(1, -(-min_tiles // max(1, nb)))          # ceil(min_tiles / nb)
    target = max(128, _round_up(-(-T // want_nt), 128))    # ~want_nt tiles along T
    cap = max(128, min(budget, target, full))

    # Prefer an exact divisor of T (no padding) as long as it is not the
    # narrow-tile slow path (< 512 lanes) unless cap itself is that small.
    if T % 128 == 0:
        for tT in range(cap, 127, -128):
            if T % tT == 0:
                if tT >= min(cap, 512):
                    return tT
                break
    return cap


def preemphasis(
    x: jax.Array,
    coef: float = 0.97,
    *,
    max_block_bytes: int | None = None,
) -> jax.Array:
    """x: (B, T) -> (B, T) float32, y[:, t] = x[:, t] - coef * x[:, t-1] (reflect pad)."""
    assert x.ndim == 2, "The number of dimensions of input tensor must be 2!"
    B, T = x.shape
    assert T >= 2, "reflect padding needs at least 2 time steps"
    x = jnp.asarray(x, jnp.float32)

    # Generation-aware block budget: smaller blocks on v7x (64 MiB VMEM).
    vmem_cap = _vmem_capacity_bytes()
    if max_block_bytes is None:
        max_block_bytes = (4 << 20) if vmem_cap <= (64 << 20) else (8 << 20)

    tb = _choose_tb(B)
    nb = max(1, B // tb)
    tT = _choose_tT(T, tb, nb, max_block_bytes)
    nt = -(-T // tT)
    T_pad = nt * tT

    x_p = x if T_pad == T else jnp.pad(x, ((0, 0), (0, T_pad - T)))

    # Seam: prev value for local column 0 of every time tile.
    #   tile 0  -> x[:, 1]          (reflect pad)
    #   tile j  -> x[:, j*tT - 1]   (last column of the previous tile)
    starts = np.arange(nt, dtype=np.int64) * tT
    prev_idx = np.where(starts == 0, 1, starts - 1)
    seam = x_p[:, prev_idx].T[:, :, None]            # (nt, B, 1)

    block_bytes = tb * tT * 4
    vmem_limit = min(max(4 * block_bytes + (4 << 20), 32 << 20), 48 << 20)

    kernel = functools.partial(_preemphasis_kernel, coef=float(coef))

    out = pl.pallas_call(
        kernel,
        out_shape=jax.ShapeDtypeStruct((B, T_pad), jnp.float32),
        grid=(nb, nt),
        in_specs=[
            # main streamed tile
            pl.BlockSpec((tb, tT), lambda i, j: (i, j)),
            # tiny per-tile seam column (tb * 4 bytes per grid step)
            pl.BlockSpec((1, tb, 1), lambda i, j: (j, i, 0)),
        ],
        out_specs=pl.BlockSpec((tb, tT), lambda i, j: (i, j)),
        compiler_params=pltpu.CompilerParams(
            dimension_semantics=("parallel", "parallel"),
            vmem_limit_bytes=vmem_limit,
        ),
    )(x_p, seam)

    return out if T_pad == T else out[:, :T]
    # TODO(synk): for maximum benefit, fuse this single HBM-stream pass into the
    # downstream framing/STFT kernel (or run in bf16) -- the only >few-% levers left.


def preemphasis_ref(x: jnp.ndarray, coef: float = 0.97) -> jnp.ndarray:
    x = jnp.asarray(x, jnp.float32)
    prev = jnp.concatenate([x[:, 1:2], x[:, :-1]], axis=1)
    return x - coef * prev


if __name__ == "__main__":
    key = jax.random.PRNGKey(0)

    # 1) Small demo shape.
    B, T = 8, 256
    x = jax.random.normal(key, (B, T), dtype=jnp.float32)
    out = jax.block_until_ready(preemphasis(x, coef=0.97))
    ref = preemphasis_ref(x, coef=0.97)
    assert out.shape == (B, T) and out.dtype == jnp.float32
    assert jnp.allclose(out, ref, atol=1e-5, rtol=1e-5), "mismatch (small)"

    # 2) Force multiple time tiles (exercises the seam path).
    x2 = jax.random.normal(jax.random.PRNGKey(0), (8, 1024), dtype=jnp.float32)
    out2 = jax.block_until_ready(preemphasis(x2, coef=0.97, max_block_bytes=8 * 1024))
    ref2 = preemphasis_ref(x2, coef=0.97)
    assert jnp.allclose(out2, ref2, atol=1e-5, rtol=1e-5), "mismatch (tiled T)"

    # 3) Ragged T (not a multiple of 128) exercises the pad-and-slice path.
    x3 = jax.random.normal(jax.random.PRNGKey(0), (8, 300), dtype=jnp.float32)
    out3 = jax.block_until_ready(preemphasis(x3, coef=0.97))
    ref3 = preemphasis_ref(x3, coef=0.97)
    assert out3.shape == (8, 300)
    assert jnp.allclose(out3, ref3, atol=1e-5, rtol=1e-5), "mismatch (ragged T)"

    print("KERNEL_OK")
</pallas_src>

<mosaic_0001>
module attributes {stable_mosaic.version = 11 : i64} {
  func.func @_preemphasis_kernel(%arg0: i32, %arg1: i32, %arg2: memref<8x128xf32, #tpu.memory_space<vmem>>, %arg3: memref<1x8x1xf32, #tpu.memory_space<vmem>>, %arg4: memref<8x128xf32, #tpu.memory_space<vmem>>) attributes {dimension_semantics = [#tpu.dimension_semantics<parallel>, #tpu.dimension_semantics<parallel>], iteration_bounds = array<i64: 1, 2>, scalar_prefetch = 0 : i64, scratch_operands = 0 : i64, tpu.core_type = #tpu.core_type<tc>, window_params = [{transform_indices = @transform_0, window_bounds = array<i64: 8, 128>}, {transform_indices = @transform_1, window_bounds = array<i64: 1, 8, 1>}, {transform_indices = @transform_2, window_bounds = array<i64: 8, 128>}]} {
    %c0 = arith.constant 0 : index
    %c0_0 = arith.constant 0 : index
    %0 = vector.load %arg2[%c0, %c0_0] : memref<8x128xf32, #tpu.memory_space<vmem>>, vector<8x128xf32>
    %c1_i32 = arith.constant 1 : i32
    %1 = tpu.dynamic_rotate %0 by %c1_i32 dim 1 : vector<8x128xf32>, i32 -> vector<8x128xf32>
    %cst = arith.constant 9.700000e-01 : f32
    %2 = vector.broadcast %cst : f32 to vector<8x128xf32>
    %3 = arith.mulf %2, %1 : vector<8x128xf32>
    %4 = arith.subf %0, %3 : vector<8x128xf32>
    %c0_1 = arith.constant 0 : index
    %c0_2 = arith.constant 0 : index
    %5 = vector.load %arg4[%c0_1, %c0_2] : memref<8x128xf32, #tpu.memory_space<vmem>>, vector<8x128xf32>
    tpu.vector_store %arg4[%c0_1, %c0_2], %4 {strides = array<i32>} : memref<8x128xf32, #tpu.memory_space<vmem>>, vector<8x128xf32>,
    %c0_3 = arith.constant 0 : index
    %c0_4 = arith.constant 0 : index
    %6 = vector.load %arg2[%c0_3, %c0_4] : memref<8x128xf32, #tpu.memory_space<vmem>>, vector<8x1xf32>
    %c0_5 = arith.constant 0 : index
    %c0_6 = arith.constant 0 : index
    %c0_7 = arith.constant 0 : index
    %7 = vector.load %arg3[%c0_5, %c0_6, %c0_7] : memref<1x8x1xf32, #tpu.memory_space<vmem>>, vector<1x8x1xf32>
    %8 = vector.shape_cast %7 : vector<1x8x1xf32> to vector<8x1xf32>
    %cst_8 = arith.constant 9.700000e-01 : f32
    %9 = vector.broadcast %cst_8 : f32 to vector<8x1xf32>
    %10 = arith.mulf %9, %8 : vector<8x1xf32>
    %11 = arith.subf %6, %10 : vector<8x1xf32>
    %c0_9 = arith.constant 0 : index
    %c0_10 = arith.constant 0 : index
    %12 = vector.load %arg4[%c0_9, %c0_10] : memref<8x128xf32, #tpu.memory_space<vmem>>, vector<8x1xf32>
    tpu.vector_store %arg4[%c0_9, %c0_10], %11 {strides = array<i32>} : memref<8x128xf32, #tpu.memory_space<vmem>>, vector<8x1xf32>,
    return
  }
  func.func @transform_0(%arg0: i32, %arg1: i32) -> (i32, i32) {
    %c0_i32 = arith.constant 0 : i32
    return %arg0, %arg1 : i32, i32
  }
  func.func @transform_1(%arg0: i32, %arg1: i32) -> (i32, i32, i32) {
    %c0_i32 = arith.constant 0 : i32
    %c0_i32_0 = arith.constant 0 : i32
    return %arg1, %arg0, %c0_i32 : i32, i32, i32
  }
  func.func @transform_2(%arg0: i32, %arg1: i32) -> (i32, i32) {
    %c0_i32 = arith.constant 0 : i32
    return %arg0, %arg1 : i32, i32
  }
}

</mosaic_0001>

<bundles_post_ra>
// kernel: tpu_custom_call.1
= control target key start
LH: loop header
LB: loop body
LE: loop exit
PB: predicated region body
PF: predicated region fallthrough
CT: control target
= control target key end

     0   :  { %7 = vsyncpa [#allocation3], 0  ;;  %s593_s0 = inlined_call_operand.vmem [shape: f32[8,256], index: 0, kind: input, shape index: {}]   ;;  %s594_s1 = inlined_call_operand.vmem [shape: f32[2,8,1], index: 1, kind: input, shape index: {}]   ;;  %s595_s2 = inlined_call_operand.hbm [shape: f32[8,256], index: 2, kind: output, shape index: {}]  }
   0x1   :  { %9 = vsyncpa [#allocation3 + $0x1], 0  ;;  %s478_s9 = smov 0   ;;  %s480_s10 = smov 0  }
   0x2   :  { %s482_s11 = smov 0   ;;  %s484_s12 = smov 0  }
   0x3   :  { %s486_s13 = smov 0   ;;  %s488_s14 = smov 0  }
   0x4 LB: > { %s313_s15 = sadd.s32 4294967295, %s459_s14   ;;  %s314_s16 = sadd.s32 4294967294, %s459_s14   ;;  %s459_s14 = sphi %s488_s14, %s15_s14   ;;  %s455_s13 = sphi %s486_s13, %s602_s13   ;;  %s451_s12 = sphi %s484_s12, %s601_s12   ;;  %s447_s11 = sphi %s482_s11, %s600_s11   ;;  %s443_s10 = sphi %s480_s10, %s599_s10   ;;  %s439_s9 = sphi %s478_s9, %s598_s9  }
   0x5   : > { %s24_s17 = sadd.s32 1, %s455_s13  ;;  %s92_s18 = sadd.s32 1, %s447_s11 }
   0x6   : > { %p25_p0 = scmp.ge.s32.totalorder %s24_s17, 2  ;;  %p102_p1 = scmp.ne.s32.totalorder %s447_s11, %s443_s10 }
   0x7   : > { %p103_p2 = scmp.eq.s32.totalorder %s313_s15, 1  ;;  %p108_p3 = scmp.ne.s32.totalorder %s443_s10, %s439_s9 }
   0x8   : > { %s604_s17 = smov (%p25_p0, %s24_s17), 0  ;;  %p109_p5 = scmp.eq.s32.totalorder %s314_s16, 1 }
   0x9   : > { %p518_p4 = por %p103_p2, %p102_p1  ;;  %s88_s20 = ssub.s32 %s455_s13, %s604_s17 }
   0xa   : > { %p317_p6 = scmp.ge.s32.totalorder %s459_s14, 1  ;;  %p90_p7 = scmp.eq.s32.totalorder %s88_s20, 0 }
   0xb   : > { %p525_p8 = por %p109_p5, %p108_p3  ;;  %p148_p9 = scmp.lt.s32.totalorder %s459_s14, 3 }
   0xc   : > { %s531_s22 = scalar_select %p90_p7, %s447_s11, %s92_s18  }
   0xd   : > { %p149_p10 = pnand %p317_p6, %p148_p9 }
   0xe   : > { %p182_p11 = scmp.lt.s32.totalorder (!%p149_p10), %s451_s12, 1  ;;  %s461_s28 = smov (!%p149_p10), 1   ;;  %vm205_vm0 = vcmask (!%p149_p10), 7168  }
   0xf   : > { %152 = sbr.rel (%p149_p10) target bundleno = 161 (0xa1), region = 28  ;;  %s177_s4 = sand.u32 (!%p149_p10), 1, %s443_s10  }
  0x10   : > { %s318_s5 = sshll.u32 (!%p149_p10), %s177_s4, 3  ;;  %s322_s6 = sshll.u32 (!%p149_p10), %s451_s12, 7 }
  0x11   : > { %s179_s7 = scalar_lea.vmem (!%p149_p10), [#allocation2], %s318_s5  ;;  %s546_s18 = scalar_lea.hbm (!%p149_p10), %s595_s2, %s322_s6 }
  0x12   : > { %s223_s8 = sshll.u32 (!%p149_p10), %s179_s7, 4  ;;  %s208_s20 = scalar_lea.sflag (!%p149_p10), [#allocation3], %s177_s4  ;;  %s548_s8 = int_to_ptr.vmem [resolvable:$true] %s223_s8 }
  0x16   : > { %s183_s23 = scalar_select %p182_p11, %s451_s12, 1 }
  0x17   : > { %s462_s12 = smov [#allocation2]  }
  0x18   : > { %s319_s24 = sshll.u32 %s183_s23, 3  ;;  %s381_s23 = scalar_lea.vmem %s548_s8, 128 }
  0x19   : > { %s187_s27 = scalar_lea.vmem %s593_s0, %s319_s24  ;;  %s194_s3 = scalar_lea.vmem %s594_s1, %s319_s24 }
  0x1a   : > { %v195_v0 = vld [vmem:[%s187_s27] sm:$0xff]  ;;  %p382_p12 = scmp.ne.s32.totalorder %s548_s8, %s381_s23  ;;  %s385_s24 = sshll.u32 %s462_s12, 4  ;;  %s386_s24 = int_to_ptr.vmem [resolvable:$false] %s385_s24 }
  0x1b   : > { %196 = vrot.lane.b32.xlu0 %v195_v0, %s461_s28  ;;  %v202_v1 = vld [vmem:[%s194_s3] sm:$0xff]  ;;  %s387_s25 = scalar_lea.vmem %s386_s24, 256  ;;  %p388_p1 = scmp.lt.s32.totalorder %s548_s8, %s386_s24 }
  0x1c   : > { %v203_v2 = vmul.f32 0.97, %v202_v1  ;;  %p383_p13 = pnand %p382_p12, %p518_p4  ;;  %p389_p2 = scmp.lt.s32.totalorder %s387_s25, %s381_s23 }
  0x1e   : > { %v204_v5 = vsub.f32 %v195_v0, %v203_v2  ;;  %p384_p0 = pneg %p383_p13  ;;  %p390_p3 = por %p389_p2, %p388_p1 }
  0x20   : > { %p391_p5 = pnand %p390_p3, %p384_p0 }
  0x8d   : > { %v197_v3 = vpop.permute.xlu0 %196 }
  0x8e   : > { %v198_v4 = vmul.f32 0.97, %v197_v3 }
  0x90   : > { %v199_v6 = vsub.f32 %v195_v0, %v198_v4 }
  0x92   : > { %200 = vst [vmem:[%s179_s7] sm:$0xff] %v199_v6 }
  0x93   : > { %206 = vst.msk [vmem:[%s179_s7] sm:$0xff] %vm205_vm0, %v204_v5 }
  0x94   : > { %394 = shalt.err (!%p391_p5)
}
  0x95   : > { %s395_s26 = scalar_lea.hbm %s546_s18, 128  ;;  %s399_s29 = scalar_lea.hbm %s595_s2, 256 }
  0x96   : > { %p396_p6 = scmp.ne.s32.totalorder %s546_s18, %s395_s26  ;;  %p400_p10 = scmp.lt.u32.totalorder %s546_s18, %s595_s2 }
  0x97   : > { %p401_p11 = scmp.lt.u32.totalorder %s399_s29, %s395_s26  ;;  %p403_p13 = scmp.lt.u32.totalorder %s395_s26, %s546_s18 }
  0x98   : > { %p397_p7 = pnand %p396_p6, %p518_p4 }
  0x99   : > { %p402_p12 = por %p401_p11, %p400_p10 }
  0x9a   : > { %p398_p9 = pneg %p397_p7 }
  0x9b   : > { %p404_p0 = por %p403_p13, %p402_p12 }
  0x9d   : > { %p405_p1 = pnand %p404_p0, %p398_p9 }
  0x9f   : > { %408 = shalt.err (!%p405_p1)
}
  0xa0   : > { %325 = dma.vmem_to_hbm [thread:$0]  (%p518_p4), %s548_s8, 128, %s546_s18, %s208_s20  }
  0xa1 PF: > { %p331_p2 = scmp.ge.s32.totalorder %s459_s14, 2  ;;  %s235_s4 = sand.u32 1, %s439_s9  }
  0xa2   : > { %s236_s5 = scalar_lea.sflag [#allocation3], %s235_s4 }
  0xa3   : > { %p328_p3 = pnand %p331_p2, %p525_p8 }
  0xa5   : > { %434 = dma.done.wait (!%p328_p3), %s236_s5, 128  }
  0xa6   : > { %436 = vsyncadd (!%p328_p3), %s236_s5, 4294967168  ;;  %s15_s14 = sadd.s32 1, %s459_s14   ;;  %s598_s9 = smov %s443_s10 }
  0xa7   : > { %p12_p5 = scmp.ge.s32.totalorder %s15_s14, 4   ;;  %s599_s10 = smov %s447_s11 }
  0xa8   : > { %s600_s11 = smov %s531_s22  ;;  %s601_s12 = smov %s455_s13 }
  0xa9   : > { %s602_s13 = smov %s604_s17  ;;  %14 = sbr.rel (!%p12_p5) target bundleno = 4 (0x4), region = 66 }
  0xb0   :  { %241 = vsyncpa [#allocation3], 1 }
  0xb1   :  { %243 = vsyncpa [#allocation3 + $0x1], 1 }

</bundles_post_ra>
